<compile_context>
chip_gen: v5e
topology: v5e:2x2
jax: 0.10.0
libtpu: 0.0.40
codegen_flags: <defaults>
</compile_context>

<pallas_src>
import jax
import jax.numpy as jnp
from jax.experimental import pallas as pl
from jax.experimental.pallas import tpu as pltpu

_LANE = 128         # last dim = 128 -> lane-dense, unmasked full-width stores
_ROW_TILE = 8192    # 8192 * 128 * 4B = 4 MiB per buffer per grid step


def _cov_sq_kernel(cov_ref, cov_sq_ref):
    # Single pass of vreg-wide multiplies on the VPU; no scratch, no phases.
    c = cov_ref[...]
    cov_sq_ref[...] = c * c


def simple_init_forward(mu: jax.Array, cov: jax.Array, *,
                        force_pallas: bool = False, row_tile: int = _ROW_TILE):
    """Equivalent of SimpleInit.forward(): returns (mu, cov ** 2)."""
    assert mu.shape == cov.shape and mu.ndim == 1
    z_dim = cov.shape[0]

    # mu is an identity pass-through in the forward: return it unchanged.
    if z_dim % _LANE != 0:
        # Element padding would materialize a full HBM copy of cov (and a
        # second one to un-pad the output) -- strictly worse than XLA's fused
        # multiply for a memory-bound elementwise op.
        return mu, cov * cov
    if not force_pallas and z_dim < row_tile * _LANE:
        # Small/medium sizes: pallas_call launch overhead dwarfs the work.
        return mu, cov * cov

    rows = z_dim // _LANE
    cov2d = cov.reshape(rows, _LANE)            # metadata-only reshape, no copy

    # One gridded, double-buffered streaming path for every size.
    #  * rows <= row_tile: block == full array (satisfies (8,128) by equality).
    #  * rows  > row_tile: fixed (row_tile, 128) blocks; the ragged last block
    #    is masked by Pallas (OOB writes dropped), so no padding is needed.
    block_rows = rows if rows <= row_tile else row_tile
    grid = (pl.cdiv(rows, block_rows),)

    cov_sq_2d = pl.pallas_call(
        _cov_sq_kernel,
        out_shape=jax.ShapeDtypeStruct((rows, _LANE), cov.dtype),
        grid=grid,
        in_specs=[pl.BlockSpec((block_rows, _LANE), lambda i: (i, 0))],
        out_specs=pl.BlockSpec((block_rows, _LANE), lambda i: (i, 0)),
        compiler_params=pltpu.CompilerParams(
            dimension_semantics=("parallel",),      # shards grid across TCs on v7x
            vmem_limit_bytes=32 * 1024 * 1024,      # 2x(in+out) tiles = 16 MiB max
        ),
    )(cov2d)

    return mu, cov_sq_2d.reshape(z_dim)             # metadata-only reshape


if __name__ == "__main__":
    key = jax.random.PRNGKey(0)
    k_mu, k_cov = jax.random.split(key)

    # Case 1: small lane-aligned z_dim, force the Pallas kernel (single block).
    z_dim = 256
    mu = jax.random.normal(k_mu, (z_dim,), dtype=jnp.float32)
    cov = jax.random.normal(k_cov, (z_dim,), dtype=jnp.float32)
    out_mu, out_cov_sq = simple_init_forward(mu, cov, force_pallas=True)
    jax.block_until_ready((out_mu, out_cov_sq))
    assert out_mu.shape == (z_dim,) and out_cov_sq.shape == (z_dim,)
    assert jnp.allclose(out_mu, mu)
    assert jnp.allclose(out_cov_sq, cov ** 2, rtol=1e-6, atol=1e-6)

    # Case 2: exercise the gridded, ragged-last-block path (rows=20, tile=8
    # -> grid=(3,), last block masked). Production default tile is 8192 rows.
    z_dim2 = 128 * 20
    mu2 = jax.random.normal(k_mu, (z_dim2,), dtype=jnp.float32)
    cov2 = jax.random.normal(k_cov, (z_dim2,), dtype=jnp.float32)
    out_mu2, out_cov_sq2 = simple_init_forward(mu2, cov2, force_pallas=True, row_tile=8)
    jax.block_until_ready((out_mu2, out_cov_sq2))
    assert out_cov_sq2.shape == (z_dim2,)
    assert jnp.allclose(out_mu2, mu2)
    assert jnp.allclose(out_cov_sq2, cov2 ** 2, rtol=1e-6, atol=1e-6)

    # Case 3: non-lane-aligned z_dim dispatches to the fused XLA multiply.
    z_dim3 = 32
    mu3 = jax.random.normal(k_mu, (z_dim3,), dtype=jnp.float32)
    cov3 = jax.random.normal(k_cov, (z_dim3,), dtype=jnp.float32)
    out_mu3, out_cov_sq3 = simple_init_forward(mu3, cov3)
    jax.block_until_ready((out_mu3, out_cov_sq3))
    assert jnp.allclose(out_mu3, mu3)
    assert jnp.allclose(out_cov_sq3, cov3 ** 2, rtol=1e-6, atol=1e-6)

    print("KERNEL_OK")
</pallas_src>

<mosaic_0001>
module attributes {stable_mosaic.version = 11 : i64} {
  func.func @_cov_sq_kernel(%arg0: i32, %arg1: memref<2x128xf32, #tpu.memory_space<vmem>>, %arg2: memref<2x128xf32, #tpu.memory_space<vmem>>) attributes {dimension_semantics = [#tpu.dimension_semantics<parallel>], iteration_bounds = array<i64: 1>, scalar_prefetch = 0 : i64, scratch_operands = 0 : i64, tpu.core_type = #tpu.core_type<tc>, window_params = [{transform_indices = @transform_0, window_bounds = array<i64: 2, 128>}, {transform_indices = @transform_1, window_bounds = array<i64: 2, 128>}]} {
    %c0 = arith.constant 0 : index
    %c0_0 = arith.constant 0 : index
    %0 = vector.load %arg1[%c0, %c0_0] : memref<2x128xf32, #tpu.memory_space<vmem>>, vector<2x128xf32>
    %1 = arith.mulf %0, %0 : vector<2x128xf32>
    %c0_1 = arith.constant 0 : index
    %c0_2 = arith.constant 0 : index
    %2 = vector.load %arg2[%c0_1, %c0_2] : memref<2x128xf32, #tpu.memory_space<vmem>>, vector<2x128xf32>
    tpu.vector_store %arg2[%c0_1, %c0_2], %1 {strides = array<i32>} : memref<2x128xf32, #tpu.memory_space<vmem>>, vector<2x128xf32>,
    return
  }
  func.func @transform_0(%arg0: i32) -> (i32, i32) {
    %c0_i32 = arith.constant 0 : i32
    %c0_i32_0 = arith.constant 0 : i32
    return %arg0, %c0_i32 : i32, i32
  }
  func.func @transform_1(%arg0: i32) -> (i32, i32) {
    %c0_i32 = arith.constant 0 : i32
    %c0_i32_0 = arith.constant 0 : i32
    return %arg0, %c0_i32 : i32, i32
  }
}

</mosaic_0001>

<bundles_post_ra>
// kernel: tpu_custom_call.1
= control target key start
LH: loop header
LB: loop body
LE: loop exit
PB: predicated region body
PF: predicated region fallthrough
CT: control target
= control target key end

     0   :  { %6 = vsyncpa [#allocation3], 0  ;;  %s115_s0 = inlined_call_operand.hbm [shape: f32[2,128], index: 0, kind: input, shape index: {}]   ;;  %s116_s1 = inlined_call_operand.hbm [shape: f32[2,128], index: 1, kind: output, shape index: {}]  }
   0x1   :  { %7 = vsyncpa [#allocation4], 0  ;;  %s13_s8 = sshll.u32 %s115_s0, 4  ;;  %s97_s9 = smov [#allocation2]   ;;  %s14_s8 = int_to_ptr.hbm [resolvable:$true] %s13_s8 }
   0x2   :  { %s15_s10 = sshll.u32 %s97_s9, 4  ;;  %s16_s10 = int_to_ptr.vmem [resolvable:$true] %s15_s10 }
   0x3   :  { %18 = dma.hbm_to_vmem [thread:$0]  %s14_s8, 32, %s16_s10, [#allocation3]  }
   0x4   :  { %93 = dma.done.wait [#allocation3], 32  }
   0x5   :  { %94 = vsyncadd [#allocation3], 4294967264  ;;  %s98_s11 = smov [#allocation5]   ;;  %s33_s15 = sshll.u32 %s116_s1, 4  ;;  %v23_v0 = vld [vmem:[#allocation2] sm:$0x3]  ;;  %s34_s15 = int_to_ptr.hbm [resolvable:$true] %s33_s15 }
   0x6   :  { %s31_s12 = sshll.u32 %s98_s11, 4  ;;  %v24_v1 = vmul.f32 %v23_v0, %v23_v0  ;;  %s32_s12 = int_to_ptr.vmem [resolvable:$true] %s31_s12 }
   0x8   :  { %25 = vst [vmem:[#allocation5] sm:$0x3] %v24_v1 }
   0x9   :  { %36 = dma.vmem_to_hbm [thread:$0]  %s32_s12, 32, %s34_s15, [#allocation4]  }
   0xa   :  { %95 = dma.done.wait [#allocation4], 32  }
   0xb   :  { %96 = vsyncadd [#allocation4], 4294967264 }
   0xc   :  { %41 = vsyncpa [#allocation3], 1 }
   0xd   :  { %42 = vsyncpa [#allocation4], 1 }

</bundles_post_ra>
